<compile_context>
chip_gen: v5e
topology: v5e:2x2
jax: 0.10.0
libtpu: 0.0.40
codegen_flags: <defaults>
</compile_context>

<pallas_src>
import functools
import math

import jax
import jax.numpy as jnp
from jax.experimental import pallas as pl
from jax.experimental.pallas import tpu as pltpu


def _round_up(n, m):
    return ((n + m - 1) // m) * m


def _cdiv(a, b):
    return -(-a // b)


def _nbytes(shape, dtype):
    return int(math.prod(shape)) * jnp.dtype(dtype).itemsize


def _mlp_kernel(x_ref, w1_ref, b1_ref, w2_ref, b2_ref, w3_ref, b3_ref, o_ref):
    # Three matmuls + ReLUs fused; the whole tile stays resident in VMEM.
    # Weight dtype (f32 for small hidden, bf16 for large) decides the MXU
    # operand dtype; accumulation is always f32 and bias-add / ReLU stay f32
    # on the VPU (v5e has no bf16 VALU path).
    w_dtype = w1_ref.dtype
    x = x_ref[...].astype(w_dtype)
    h1 = jnp.dot(x, w1_ref[...], preferred_element_type=jnp.float32) + b1_ref[...]
    h1 = jnp.maximum(h1, 0.0)          # ReLU  (Dropout eval-mode = identity)
    h2 = jnp.dot(h1.astype(w_dtype), w2_ref[...],
                 preferred_element_type=jnp.float32) + b2_ref[...]
    h2 = jnp.maximum(h2, 0.0)          # ReLU  (Dropout eval-mode = identity)
    out = jnp.dot(h2.astype(w_dtype), w3_ref[...],
                  preferred_element_type=jnp.float32) + b3_ref[...]
    o_ref[...] = out.astype(o_ref.dtype)


def prepare_params(w1, b1, w2, b2, w3, b3):
    """One-time weight layout: pad the output lanes of W3/b3 to 128 and pick
    the MXU operand dtype. Call once; reuse the result for every forward."""
    hidden = w1.shape[1]
    out_size = w3.shape[1]
    np_ = _round_up(out_size, 128)          # lane-dense output, no masked vst
    # f32 matmuls while the kernel is overhead/DMA-bound; bf16 weights only
    # when hidden is large enough that weight HBM/VMEM bytes actually bind.
    w_dtype = jnp.float32 if hidden <= 256 else jnp.bfloat16

    w1c = w1.astype(w_dtype)
    w2c = w2.astype(w_dtype)
    w3p = jnp.pad(w3, ((0, 0), (0, np_ - out_size))).astype(w_dtype)
    b1f = b1.astype(jnp.float32)
    b2f = b2.astype(jnp.float32)
    b3p = jnp.pad(b3, ((0, 0), (0, np_ - out_size))).astype(jnp.float32)
    return (w1c, b1f, w2c, b2f, w3p, b3p)


def _choose_block_b(B, *, cap=1024, split_threshold=512):
    """Batch tile: big enough to amortize per-step overhead, small enough to
    bound padding waste, and >=2 tiles for large B so v7x's 2nd TC has work."""
    tiles = max(1, _cdiv(B, cap))
    if B >= split_threshold:
        tiles = max(tiles, 2)
    return _round_up(_cdiv(B, tiles), 8)


@functools.partial(jax.jit, static_argnames=("out_size", "block_b"))
def driving_model_forward(x, params, *, out_size=4, block_b=None):
    w1c, b1f, w2c, b2f, w3p, b3p = params
    B, in_size = x.shape
    hidden = w1c.shape[1]
    np_ = w3p.shape[1]

    if block_b is None:
        block_b = _choose_block_b(B)

    grid_steps = _cdiv(B, block_b)
    bp = grid_steps * block_b
    xf = x.astype(jnp.float32)
    if bp > B:
        xf = jnp.pad(xf, ((0, bp - B), (0, 0)))   # batch rows only; K untouched

    # Constant-index weights: single-buffer them once they are big enough to
    # matter for VMEM (first binds on v7x's 64 MiB / 32 MiB scoped default).
    weight_mode = {}
    vmem_limit = None
    if hidden >= 512:
        weight_mode = dict(pipeline_mode=pl.Buffered(1))
        w_bytes = (_nbytes(w1c.shape, w1c.dtype) + _nbytes(w2c.shape, w2c.dtype)
                   + _nbytes(w3p.shape, w3p.dtype) + _nbytes(b1f.shape, jnp.float32)
                   + _nbytes(b2f.shape, jnp.float32) + _nbytes(b3p.shape, jnp.float32))
        io_bytes = 2 * (_nbytes((block_b, in_size), jnp.float32)
                        + _nbytes((block_b, np_), jnp.float32))
        vmem_limit = int(w_bytes + io_bytes + (8 << 20))  # + f32 intermediates

    in_specs = [
        pl.BlockSpec((block_b, in_size), lambda i: (i, 0)),              # x tile
        pl.BlockSpec((in_size, hidden), lambda i: (0, 0), **weight_mode),  # W1
        pl.BlockSpec((1, hidden), lambda i: (0, 0)),                     # b1
        pl.BlockSpec((hidden, hidden), lambda i: (0, 0), **weight_mode),   # W2
        pl.BlockSpec((1, hidden), lambda i: (0, 0)),                     # b2
        pl.BlockSpec((hidden, np_), lambda i: (0, 0), **weight_mode),      # W3
        pl.BlockSpec((1, np_), lambda i: (0, 0)),                        # b3
    ]
    out_spec = pl.BlockSpec((block_b, np_), lambda i: (i, 0))

    flops = 2 * bp * (in_size * hidden + hidden * hidden + hidden * np_)
    bytes_accessed = (_nbytes((bp, in_size), jnp.float32)
                      + _nbytes(w1c.shape, w1c.dtype) + _nbytes(w2c.shape, w2c.dtype)
                      + _nbytes(w3p.shape, w3p.dtype)
                      + _nbytes(b1f.shape, jnp.float32) + _nbytes(b2f.shape, jnp.float32)
                      + _nbytes(b3p.shape, jnp.float32)
                      + _nbytes((bp, np_), jnp.float32))
    cost = pl.CostEstimate(flops=flops, transcendentals=0,
                           bytes_accessed=bytes_accessed)

    out = pl.pallas_call(
        _mlp_kernel,
        out_shape=jax.ShapeDtypeStruct((bp, np_), jnp.float32),
        grid=(grid_steps,),
        in_specs=in_specs,
        out_specs=out_spec,
        cost_estimate=cost,
        compiler_params=pltpu.CompilerParams(
            dimension_semantics=("parallel",),   # megacore-sharded on v7x
            vmem_limit_bytes=vmem_limit,
        ),
    )(xf, w1c, b1f, w2c, b2f, w3p, b3p)

    return out[:B, :out_size]


def init_params(key, input_size, hidden_size, out_size=4):
    """Deterministic synthetic init (PyTorch-style uniform bounds)."""
    ks = jax.random.split(key, 6)

    def lin(kw, kb, fan_in, fan_out):
        bound = 1.0 / jnp.sqrt(fan_in)
        # stored as (in, out): already transposed relative to torch's (out, in)
        w = jax.random.uniform(kw, (fan_in, fan_out), jnp.float32, -bound, bound)
        b = jax.random.uniform(kb, (1, fan_out), jnp.float32, -bound, bound)
        return w, b

    w1, b1 = lin(ks[0], ks[1], input_size, hidden_size)
    w2, b2 = lin(ks[2], ks[3], hidden_size, hidden_size)
    w3, b3 = lin(ks[4], ks[5], hidden_size, out_size)
    return w1, b1, w2, b2, w3, b3


if __name__ == "__main__":
    key = jax.random.PRNGKey(0)
    k_x, k_p = jax.random.split(key)

    batch = 16
    input_size = 32     # small synthetic feature vector
    hidden_size = 128   # scaled-down from the default 256

    x = jax.random.normal(k_x, (batch, input_size), jnp.float32)
    raw_params = init_params(k_p, input_size, hidden_size)

    # One-time weight layout/cast, reused across forwards (hoisted per review).
    params = jax.tree_util.tree_map(jax.block_until_ready, prepare_params(*raw_params))

    out = driving_model_forward(x, params, out_size=4)
    out = jax.block_until_ready(out)

    # Cross-check against a plain-JAX f32 reference of the same forward pass.
    w1, b1, w2, b2, w3, b3 = raw_params
    ref = jnp.maximum(x @ w1 + b1, 0.0)
    ref = jnp.maximum(ref @ w2 + b2, 0.0)
    ref = ref @ w3 + b3
    assert out.shape == (batch, 4)
    # f32 MXU matmuls at this size -> tight tolerance vs the f32 reference.
    assert jnp.allclose(out, ref, atol=1e-4, rtol=1e-4)

    print("KERNEL_OK")
</pallas_src>

<mosaic_0001>
module attributes {stable_mosaic.version = 11 : i64} {
  func.func @_mlp_kernel(%arg0: i32, %arg1: memref<16x32xf32, #tpu.memory_space<vmem>>, %arg2: memref<32x128xf32, #tpu.memory_space<vmem>>, %arg3: memref<1x128xf32, #tpu.memory_space<vmem>>, %arg4: memref<128x128xf32, #tpu.memory_space<vmem>>, %arg5: memref<1x128xf32, #tpu.memory_space<vmem>>, %arg6: memref<128x128xf32, #tpu.memory_space<vmem>>, %arg7: memref<1x128xf32, #tpu.memory_space<vmem>>, %arg8: memref<16x128xf32, #tpu.memory_space<vmem>>) attributes {dimension_semantics = [#tpu.dimension_semantics<parallel>], iteration_bounds = array<i64: 1>, scalar_prefetch = 0 : i64, scratch_operands = 0 : i64, tpu.core_type = #tpu.core_type<tc>, window_params = [{transform_indices = @transform_0, window_bounds = array<i64: 16, 32>}, {pipeline_mode = #tpu.pipeline_mode<synchronous>, transform_indices = @transform_1, window_bounds = array<i64: 32, 128>}, {pipeline_mode = #tpu.pipeline_mode<synchronous>, transform_indices = @transform_2, window_bounds = array<i64: 1, 128>}, {pipeline_mode = #tpu.pipeline_mode<synchronous>, transform_indices = @transform_3, window_bounds = array<i64: 128, 128>}, {pipeline_mode = #tpu.pipeline_mode<synchronous>, transform_indices = @transform_4, window_bounds = array<i64: 1, 128>}, {pipeline_mode = #tpu.pipeline_mode<synchronous>, transform_indices = @transform_5, window_bounds = array<i64: 128, 128>}, {pipeline_mode = #tpu.pipeline_mode<synchronous>, transform_indices = @transform_6, window_bounds = array<i64: 1, 128>}, {transform_indices = @transform_7, window_bounds = array<i64: 16, 128>}]} {
    %c0 = arith.constant 0 : index
    %c0_0 = arith.constant 0 : index
    %0 = vector.load %arg1[%c0, %c0_0] : memref<16x32xf32, #tpu.memory_space<vmem>>, vector<16x32xf32>
    %c0_1 = arith.constant 0 : index
    %c0_2 = arith.constant 0 : index
    %1 = vector.load %arg2[%c0_1, %c0_2] : memref<32x128xf32, #tpu.memory_space<vmem>>, vector<32x128xf32>
    %cst = arith.constant dense<0.000000e+00> : vector<16x128xf32>
    %2 = tpu.matmul %0, %1, %cst {dimension_numbers = #tpu.dot_dimension_numbers<[1], [0], [0], [1], [0, 0, 1, 1], [], []>} : vector<16x32xf32>, vector<32x128xf32>, vector<16x128xf32> -> vector<16x128xf32>
    %c0_3 = arith.constant 0 : index
    %c0_4 = arith.constant 0 : index
    %3 = vector.load %arg3[%c0_3, %c0_4] : memref<1x128xf32, #tpu.memory_space<vmem>>, vector<1x128xf32>
    %4 = vector.broadcast %3 : vector<1x128xf32> to vector<16x128xf32>
    %5 = arith.addf %2, %4 : vector<16x128xf32>
    %cst_5 = arith.constant 0.000000e+00 : f32
    %6 = vector.broadcast %cst_5 : f32 to vector<16x128xf32>
    %7 = arith.maximumf %5, %6 : vector<16x128xf32>
    %c0_6 = arith.constant 0 : index
    %c0_7 = arith.constant 0 : index
    %8 = vector.load %arg4[%c0_6, %c0_7] : memref<128x128xf32, #tpu.memory_space<vmem>>, vector<128x128xf32>
    %cst_8 = arith.constant dense<0.000000e+00> : vector<16x128xf32>
    %9 = tpu.matmul %7, %8, %cst_8 {dimension_numbers = #tpu.dot_dimension_numbers<[1], [0], [0], [1], [0, 0, 1, 1], [], []>} : vector<16x128xf32>, vector<128x128xf32>, vector<16x128xf32> -> vector<16x128xf32>
    %c0_9 = arith.constant 0 : index
    %c0_10 = arith.constant 0 : index
    %10 = vector.load %arg5[%c0_9, %c0_10] : memref<1x128xf32, #tpu.memory_space<vmem>>, vector<1x128xf32>
    %11 = vector.broadcast %10 : vector<1x128xf32> to vector<16x128xf32>
    %12 = arith.addf %9, %11 : vector<16x128xf32>
    %cst_11 = arith.constant 0.000000e+00 : f32
    %13 = vector.broadcast %cst_11 : f32 to vector<16x128xf32>
    %14 = arith.maximumf %12, %13 : vector<16x128xf32>
    %c0_12 = arith.constant 0 : index
    %c0_13 = arith.constant 0 : index
    %15 = vector.load %arg6[%c0_12, %c0_13] : memref<128x128xf32, #tpu.memory_space<vmem>>, vector<128x128xf32>
    %cst_14 = arith.constant dense<0.000000e+00> : vector<16x128xf32>
    %16 = tpu.matmul %14, %15, %cst_14 {dimension_numbers = #tpu.dot_dimension_numbers<[1], [0], [0], [1], [0, 0, 1, 1], [], []>} : vector<16x128xf32>, vector<128x128xf32>, vector<16x128xf32> -> vector<16x128xf32>
    %c0_15 = arith.constant 0 : index
    %c0_16 = arith.constant 0 : index
    %17 = vector.load %arg7[%c0_15, %c0_16] : memref<1x128xf32, #tpu.memory_space<vmem>>, vector<1x128xf32>
    %18 = vector.broadcast %17 : vector<1x128xf32> to vector<16x128xf32>
    %19 = arith.addf %16, %18 : vector<16x128xf32>
    %c0_17 = arith.constant 0 : index
    %c0_18 = arith.constant 0 : index
    %20 = vector.load %arg8[%c0_17, %c0_18] : memref<16x128xf32, #tpu.memory_space<vmem>>, vector<16x128xf32>
    tpu.vector_store %arg8[%c0_17, %c0_18], %19 {strides = array<i32>} : memref<16x128xf32, #tpu.memory_space<vmem>>, vector<16x128xf32>,
    return
  }
  func.func @transform_0(%arg0: i32) -> (i32, i32) {
    %c0_i32 = arith.constant 0 : i32
    %c0_i32_0 = arith.constant 0 : i32
    return %arg0, %c0_i32 : i32, i32
  }
  func.func @transform_1(%arg0: i32) -> (i32, i32) {
    %c0_i32 = arith.constant 0 : i32
    %c0_i32_0 = arith.constant 0 : i32
    %c0_i32_1 = arith.constant 0 : i32
    return %c0_i32, %c0_i32_0 : i32, i32
  }
  func.func @transform_2(%arg0: i32) -> (i32, i32) {
    %c0_i32 = arith.constant 0 : i32
    %c0_i32_0 = arith.constant 0 : i32
    %c0_i32_1 = arith.constant 0 : i32
    return %c0_i32, %c0_i32_0 : i32, i32
  }
  func.func @transform_3(%arg0: i32) -> (i32, i32) {
    %c0_i32 = arith.constant 0 : i32
    %c0_i32_0 = arith.constant 0 : i32
    %c0_i32_1 = arith.constant 0 : i32
    return %c0_i32, %c0_i32_0 : i32, i32
  }
  func.func @transform_4(%arg0: i32) -> (i32, i32) {
    %c0_i32 = arith.constant 0 : i32
    %c0_i32_0 = arith.constant 0 : i32
    %c0_i32_1 = arith.constant 0 : i32
    return %c0_i32, %c0_i32_0 : i32, i32
  }
  func.func @transform_5(%arg0: i32) -> (i32, i32) {
    %c0_i32 = arith.constant 0 : i32
    %c0_i32_0 = arith.constant 0 : i32
    %c0_i32_1 = arith.constant 0 : i32
    return %c0_i32, %c0_i32_0 : i32, i32
  }
  func.func @transform_6(%arg0: i32) -> (i32, i32) {
    %c0_i32 = arith.constant 0 : i32
    %c0_i32_0 = arith.constant 0 : i32
    %c0_i32_1 = arith.constant 0 : i32
    return %c0_i32, %c0_i32_0 : i32, i32
  }
  func.func @transform_7(%arg0: i32) -> (i32, i32) {
    %c0_i32 = arith.constant 0 : i32
    %c0_i32_0 = arith.constant 0 : i32
    return %arg0, %c0_i32 : i32, i32
  }
}

</mosaic_0001>

<bundles_post_ra>
// kernel: driving_model_forward.1
= control target key start
LH: loop header
LB: loop body
LE: loop exit
PB: predicated region body
PF: predicated region fallthrough
CT: control target
= control target key end

     0   :  { %12 = vsyncpa [#allocation3], 0  ;;  %s432_s0 = inlined_call_operand.hbm [shape: f32[16,32], index: 0, kind: input, shape index: {}]   ;;  %s433_s1 = inlined_call_operand.hbm [shape: f32[32,128], index: 1, kind: input, shape index: {}]   ;;  %s434_s2 = inlined_call_operand.vmem [shape: f32[1,128], index: 2, kind: input, shape index: {}]   ;;  %s435_s3 = inlined_call_operand.hbm [shape: f32[128,128], index: 3, kind: input, shape index: {}]   ;;  %s436_s4 = inlined_call_operand.vmem [shape: f32[1,128], index: 4, kind: input, shape index: {}]   ;;  %s437_s5 = inlined_call_operand.hbm [shape: f32[128,128], index: 5, kind: input, shape index: {}]   ;;  %s438_s6 = inlined_call_operand.vmem [shape: f32[1,128], index: 6, kind: input, shape index: {}]   ;;  %s439_s7 = inlined_call_operand.vmem [shape: f32[16,128], index: 7, kind: output, shape index: {}]  }
   0x1   :  { %13 = vsyncpa [#allocation5], 0 }
   0x2   :  { %14 = vsyncpa [#allocation8], 0  ;;  %s32_s26 = sshll.u32 %s433_s1, 4  ;;  %s357_s27 = smov [#allocation4]   ;;  %s33_s26 = int_to_ptr.hbm [resolvable:$true] %s32_s26 }
   0x3   :  { %s34_s28 = sshll.u32 %s357_s27, 4  ;;  %s19_s8 = sshll.u32 %s432_s0, 4  ;;  %s35_s28 = int_to_ptr.vmem [resolvable:$true] %s34_s28  ;;  %s20_s8 = int_to_ptr.hbm [resolvable:$true] %s19_s8 }
   0x4   :  { %s358_s9 = smov 128   ;;  %s359_s10 = smov 8  }
   0x5   :  { %40 = dma.hbm_to_vmem [thread:$0]  %s33_s26, 512, %s35_s28, [#allocation5], %s358_s9, %s358_s9, %s359_s10  }
   0x6   :  { %s360_s11 = smov [#allocation2]   ;;  %s47_s15 = sshll.u32 %s435_s3, 4  ;;  %s48_s15 = int_to_ptr.hbm [resolvable:$true] %s47_s15 }
   0x7   :  { %s21_s12 = sshll.u32 %s360_s11, 4  ;;  %s62_s17 = sshll.u32 %s437_s5, 4  ;;  %s22_s12 = int_to_ptr.vmem [resolvable:$true] %s21_s12  ;;  %s63_s17 = int_to_ptr.hbm [resolvable:$true] %s62_s17 }
   0x8   :  { %27 = dma.hbm_to_vmem [thread:$0]  %s20_s8, 256, %s22_s12, [#allocation3], %s358_s9, %s358_s9, %s359_s10  }
   0x9   :  { %s361_s18 = smov [#allocation6]   ;;  %s362_s0 = smov [#allocation7]  }
   0xa   :  { %s49_s19 = sshll.u32 %s361_s18, 4  ;;  %s64_s20 = sshll.u32 %s362_s0, 4  ;;  %s50_s19 = int_to_ptr.vmem [resolvable:$true] %s49_s19  ;;  %s65_s20 = int_to_ptr.vmem [resolvable:$true] %s64_s20 }
   0xb   :  { %55 = dma.hbm_to_vmem [thread:$0]  %s48_s15, 2048, %s50_s19, [#allocation5], %s358_s9, %s358_s9, %s359_s10  }
   0xc   :  { %70 = dma.hbm_to_vmem [thread:$0]  %s63_s17, 2048, %s65_s20, [#allocation8], %s358_s9, %s358_s9, %s359_s10  }
   0xd   :  { %351 = dma.done.wait [#allocation3], 256  }
   0xe   :  { %352 = vsyncadd [#allocation3], 4294967040 }
   0xf   :  { %353 = dma.done.wait [#allocation5], 2560  }
  0x10   :  { %354 = vsyncadd [#allocation5], 4294964736 }
  0x11   :  { %355 = dma.done.wait [#allocation8], 2048  }
  0x12   :  { %356 = vsyncadd [#allocation8], 4294965248  ;;  %v94_v0 = vld [vmem:[#allocation4 + $0x18] sm:$0xff]  ;;  %v93_v1 = vld [vmem:[#allocation4 + $0x10] sm:$0xff]  ;;  %vm99_vm0 = vcmask 261120  }
  0x13   :  { %118 = vmatpush.msra.mxu0 %v94_v0  ;;  %v92_v2 = vld [vmem:[#allocation4 + $0x8] sm:$0xff]  ;;  %v146_v3 = vld [vmem:[#allocation6 + $0x78] sm:$0xff]  ;;  %v145_v4 = vld [vmem:[#allocation6 + $0x70] sm:$0xff] }
  0x14   :  { %151 = vmatpush.msra.mxu1 %v146_v3  ;;  %v91_v5 = vld [vmem:[#allocation4] sm:$0xff]  ;;  %v144_v6 = vld [vmem:[#allocation6 + $0x68] sm:$0xff]  ;;  %230 = vmatpush.msra.mxu3 %v146_v3  ;;  %v89_v7 = vld [vmem:[#allocation2] sm:$0xff] }
  0x15   :  { %119 = vmatpush.msra.mxu0 %v93_v1  ;;  %v143_v8 = vld [vmem:[#allocation6 + $0x60] sm:$0xff]  ;;  %v142_v9 = vld [vmem:[#allocation6 + $0x58] sm:$0xff]  ;;  %v141_v10 = vld [vmem:[#allocation6 + $0x50] sm:$0xff] }
  0x16   :  { %152 = vmatpush.msra.mxu1 %v145_v4  ;;  %231 = vmatpush.msra.mxu3 %v145_v4  ;;  %v140_v11 = vld [vmem:[#allocation6 + $0x48] sm:$0xff]  ;;  %v90_v12 = vld [vmem:[#allocation2 + $0x8] sm:$0xff]  ;;  %v139_v13 = vld [vmem:[#allocation6 + $0x40] sm:$0xff] }
  0x17   :  { %120 = vmatpush.msra.mxu0 %v92_v2  ;;  %v138_v14 = vld [vmem:[#allocation6 + $0x38] sm:$0xff]  ;;  %v137_v15 = vld [vmem:[#allocation6 + $0x30] sm:$0xff]  ;;  %v136_v16 = vld [vmem:[#allocation6 + $0x28] sm:$0xff] }
  0x18   :  { %153 = vmatpush.msra.mxu1 %v144_v6  ;;  %232 = vmatpush.msra.mxu3 %v144_v6  ;;  %v135_v17 = vld [vmem:[#allocation6 + $0x20] sm:$0xff]  ;;  %v134_v18 = vld [vmem:[#allocation6 + $0x18] sm:$0xff]  ;;  %v133_v19 = vld [vmem:[#allocation6 + $0x10] sm:$0xff] }
  0x19   :  { %121 = vmatpush.msra.mxu0 %v91_v5  ;;  %v132_v20 = vld [vmem:[#allocation6 + $0x8] sm:$0xff]  ;;  %v131_v21 = vld [vmem:[#allocation6] sm:$0xff]  ;;  %v191_v22 = vld [vmem:[#allocation7 + $0x78] sm:$0xff] }
  0x1a   :  { %228 = vmatmul.msk.f32.vlgmr.msra.gmra.mxu0 %vm99_vm0, %v89_v7  ;;  %154 = vmatpush.msra.mxu1 %v143_v8  ;;  %v190_v23 = vld [vmem:[#allocation7 + $0x70] sm:$0xff]  ;;  %v189_v24 = vld [vmem:[#allocation7 + $0x68] sm:$0xff]  ;;  %v188_v25 = vld [vmem:[#allocation7 + $0x60] sm:$0xff] }
  0x1b   :  { %233 = vmatpush.msra.mxu3 %v143_v8  ;;  %196 = vmatpush.msra.mxu2 %v191_v22  ;;  %v187_v26 = vld [vmem:[#allocation7 + $0x58] sm:$0xff]  ;;  %v186_v27 = vld [vmem:[#allocation7 + $0x50] sm:$0xff]  ;;  %v185_v28 = vld [vmem:[#allocation7 + $0x48] sm:$0xff] }
  0x1c   :  { %155 = vmatpush.msra.mxu1 %v142_v9  ;;  %v184_v29 = vld [vmem:[#allocation7 + $0x40] sm:$0xff]  ;;  %v183_v30 = vld [vmem:[#allocation7 + $0x38] sm:$0xff]  ;;  %v252_v31 = vld [vmem:[%s434_s2] ss:$0 sm:$0xff] }
  0x1d   :  { %234 = vmatpush.msra.mxu3 %v142_v9  ;;  %197 = vmatpush.msra.mxu2 %v190_v23  ;;  %v182_v32 = vld [vmem:[#allocation7 + $0x30] sm:$0xff]  ;;  %v181_v33 = vld [vmem:[#allocation7 + $0x28] sm:$0xff]  ;;  %v180_v36 = vld [vmem:[#allocation7 + $0x20] sm:$0xff] }
  0x1e   :  { %156 = vmatpush.msra.mxu1 %v141_v10  ;;  %v179_v38 = vld [vmem:[#allocation7 + $0x18] sm:$0xff]  ;;  %v178_v42 = vld [vmem:[#allocation7 + $0x10] sm:$0xff]  ;;  %v177_v43 = vld [vmem:[#allocation7 + $0x8] sm:$0xff] }
  0x1f   :  { %235 = vmatpush.msra.mxu3 %v141_v10  ;;  %198 = vmatpush.msra.mxu2 %v189_v24  ;;  %v176_v44 = vld [vmem:[#allocation7] sm:$0xff]  ;;  %v253_v45 = vld [vmem:[%s436_s4] ss:$0 sm:$0xff] }
  0x20   :  { %157 = vmatpush.msra.mxu1 %v140_v11  ;;  %v254_v52 = vld [vmem:[%s438_s6] ss:$0 sm:$0xff] }
  0x21   :  { %236 = vmatpush.msra.mxu3 %v140_v11  ;;  %199 = vmatpush.msra.mxu2 %v188_v25 }
  0x22   :  { %229 = vmatmul.msk.f32.gmra.mxu0 %vm99_vm0, %v90_v12  ;;  %158 = vmatpush.msra.mxu1 %v139_v13 }
  0x23   :  { %237 = vmatpush.msra.mxu3 %v139_v13  ;;  %200 = vmatpush.msra.mxu2 %v187_v26 }
  0x24   :  { %159 = vmatpush.msra.mxu1 %v138_v14 }
  0x25   :  { %238 = vmatpush.msra.mxu3 %v138_v14  ;;  %201 = vmatpush.msra.mxu2 %v186_v27 }
  0x26   :  { %160 = vmatpush.msra.mxu1 %v137_v15 }
  0x27   :  { %239 = vmatpush.msra.mxu3 %v137_v15  ;;  %202 = vmatpush.msra.mxu2 %v185_v28 }
  0x28   :  { %161 = vmatpush.msra.mxu1 %v136_v16 }
  0x29   :  { %240 = vmatpush.msra.mxu3 %v136_v16  ;;  %203 = vmatpush.msra.mxu2 %v184_v29 }
  0x2a   :  { %162 = vmatpush.msra.mxu1 %v135_v17 }
  0x2b   :  { %241 = vmatpush.msra.mxu3 %v135_v17  ;;  %204 = vmatpush.msra.mxu2 %v183_v30 }
  0x2c   :  { %163 = vmatpush.msra.mxu1 %v134_v18 }
  0x2d   :  { %242 = vmatpush.msra.mxu3 %v134_v18  ;;  %205 = vmatpush.msra.mxu2 %v182_v32 }
  0x2e   :  { %164 = vmatpush.msra.mxu1 %v133_v19 }
  0x2f   :  { %243 = vmatpush.msra.mxu3 %v133_v19  ;;  %206 = vmatpush.msra.mxu2 %v181_v33 }
  0x30   :  { %165 = vmatpush.msra.mxu1 %v132_v20 }
  0x31   :  { %244 = vmatpush.msra.mxu3 %v132_v20  ;;  %207 = vmatpush.msra.mxu2 %v180_v36 }
  0x32   :  { %166 = vmatpush.msra.mxu1 %v131_v21 }
  0x33   :  { %245 = vmatpush.msra.mxu3 %v131_v21  ;;  %208 = vmatpush.msra.mxu2 %v179_v38 }
  0x35   :  { %209 = vmatpush.msra.mxu2 %v178_v42 }
  0x37   :  { %210 = vmatpush.msra.mxu2 %v177_v43 }
  0x39   :  { %211 = vmatpush.msra.mxu2 %v176_v44 }
  0x97   :  { %v123_v34 = vpop.f32.mrf.mxu0 }
  0x98   :  { %v124_v35 = vadd.f32 %v252_v31, %v123_v34 }
  0x9a   :  { %v129_v37 = vmax.f32 %v124_v35, 0.0 }
  0x9c   :  { %167 = vmatmul.f32.vlgmr.msra.gmra.mxu1 %v129_v37 }
  0x9f   :  { %v126_v39 = vpop.f32.mrf.mxu0 }
  0xa0   :  { %v127_v40 = vadd.f32 %v252_v31, %v126_v39 }
  0xa2   :  { %v130_v41 = vmax.f32 %v127_v40, 0.0 }
  0xa4   :  { %170 = vmatmul.f32.vlgmr.msra.gmra.mxu3 %v130_v41 }
 0x119   :  { %v168_v46 = vpop.f32.mrf.mxu1 }
 0x11a   :  { %v169_v47 = vadd.f32 %v253_v45, %v168_v46 }
 0x11c   :  { %v174_v48 = vmax.f32 %v169_v47, 0.0 }
 0x11e   :  { %212 = vmatmul.f32.vlgmr.msra.gmra.mxu2 %v174_v48 }
 0x127   :  { %v171_v49 = vpop.f32.mrf.mxu3 }
 0x128   :  { %v172_v50 = vadd.f32 %v253_v45, %v171_v49 }
 0x12a   :  { %v175_v51 = vmax.f32 %v172_v50, 0.0 }
 0x12c   :  { %215 = vmatmul.f32.gmra.mxu2 %v175_v51 }
 0x1a1   :  { %v213_v53 = vpop.f32.mrf.mxu2 }
 0x1a2   :  { %v214_v54 = vadd.f32 %v254_v52, %v213_v53 }
 0x1a4   :  { %219 = vst [vmem:[%s439_s7] sm:$0xff] %v214_v54 }
 0x1af   :  { %v216_v55 = vpop.f32.mrf.mxu2 }
 0x1b0   :  { %v217_v56 = vadd.f32 %v254_v52, %v216_v55 }
 0x1b2   :  { %220 = vst [vmem:[%s439_s7 + $0x8] sm:$0xff] %v217_v56 }
 0x1b3   :  { %225 = vsyncpa [#allocation3], 1 }
 0x1b4   :  { %226 = vsyncpa [#allocation5], 1 }
 0x1b5   :  { %227 = vsyncpa [#allocation8], 1 }

</bundles_post_ra>
